<compile_context>
chip_gen: v7x
topology: tpu7x:2x2x1
jax: 0.10.0
libtpu: 0.0.40
codegen_flags: <defaults>
</compile_context>

<pallas_src>
import functools
import math

import jax
import jax.numpy as jnp
from jax.experimental import pallas as pl
from jax.experimental.pallas import tpu as pltpu

_NEG_BIG = 1e30  # finite "minus infinity" for masked (non-edge) logits


def _gat_proj_kernel(xa_ref, w_ref, aw_ref, feat_ref, lr_ref):
    """Per node-row tile: bf16 feat slab (with per-head ones column) and [el | er]."""
    slab = jnp.dot(xa_ref[...], w_ref[...], preferred_element_type=jnp.float32)  # [TP, hdp]
    feat_ref[...] = slab.astype(jnp.bfloat16)
    # Fused left/right logit projection (block-diagonal attn_l / attn_r): one MXU pass.
    lr_ref[...] = jnp.dot(slab, aw_ref[...], preferred_element_type=jnp.float32)  # [TP, 2H]


def _gat_attn_kernel(adj_ref, er_ref, elt_ref, feat_ref, out_ref,
                     m_ref, acc_ref,
                     *, num_heads, out_feats, slab_w, negative_slope):
    """One (dst_tile, src_tile) step of the online-softmax GAT aggregation."""
    ks = pl.program_id(1)

    @pl.when(ks == 0)
    def _():
        m_ref[...] = jnp.full_like(m_ref, -_NEG_BIG)
        acc_ref[...] = jnp.zeros_like(acc_ref)

    # Additive edge-mask bias, hoisted out of the head loop. Arithmetic form
    # (no select, no mask relayout): 0 on edges, -1e30 on non-edges.
    nbias = (adj_ref[...].astype(jnp.float32) - 1.0) * jnp.float32(_NEG_BIG)  # [TD, TS]

    er = er_ref[...]                              # [TD, H]
    elt = elt_ref[...]                            # [H, TS] (pre-transposed in wrapper)

    for h in range(num_heads):                    # static unroll, H is small
        z = er[:, h:h + 1] + elt[h:h + 1, :]      # [TD, TS]
        # 2-op LeakyReLU (valid for 0 <= slope <= 1) + additive mask bias.
        e = jnp.maximum(z, negative_slope * z) + nbias

        m_old = m_ref[:, h:h + 1]
        m_new = jnp.maximum(m_old, jnp.max(e, axis=1, keepdims=True))
        a = jnp.exp(m_old - m_new)                # rescale of running stats
        # Non-edge entries underflow to exactly 0 once any real edge (the
        # guaranteed self-loop) contributes a finite running max; transient
        # garbage in edge-free rows is rescaled away by `a == 0` later.
        p = jnp.exp(e - m_new).astype(jnp.bfloat16)

        sl = slice(h * slab_w, (h + 1) * slab_w)
        # bf16 MXU matmul with f32 accumulation. The feat slab carries a
        # per-head ones column, so this single matmul also produces the
        # softmax denominator (row-sum of p) -> no XLU sum reduction and no
        # separate l scratch.
        acc_ref[:, sl] = a * acc_ref[:, sl] + jnp.dot(
            p, feat_ref[:, sl], preferred_element_type=jnp.float32)
        m_ref[:, h:h + 1] = m_new

    @pl.when(ks == pl.num_programs(1) - 1)
    def _():
        # Normalize inside VMEM scratch, then ONE lane-dense full-width store.
        for h in range(num_heads):
            sl = slice(h * slab_w, (h + 1) * slab_w)
            c = h * slab_w + out_feats            # denominator column of this head
            l = jnp.maximum(acc_ref[:, c:c + 1], 1e-30)   # guard padded rows
            inv = pl.reciprocal(l, approx=True)   # EUP slot, off the VPU path
            acc_ref[:, sl] = acc_ref[:, sl] * inv
        out_ref[...] = acc_ref[...]


def gat_conv(x, adj, w, attn_l, attn_r, *, negative_slope=0.2,
             dst_tile=512, src_tile=1024):
    """x: [N, Din] f32, adj: [N, N] (adj[dst, src] in {0,1}, self-loops added),
    w: [Din, H*D] (= torch fc.weight.T), attn_l/attn_r: [H, D].
    Returns [N, H, D] f32 (matches torch GATConv output layout)."""
    n, d_in = x.shape
    num_heads, out_feats = attn_l.shape
    assert 0.0 <= negative_slope <= 1.0, "max-form LeakyReLU requires slope in [0, 1]"
    assert dst_tile % 128 == 0 and src_tile % 128 == 0

    # Per-head slab width: D feature cols + 1 denominator-ones col + zero pad.
    slab_w = -(-(out_feats + 1) // 8) * 8
    if 128 % num_heads == 0:
        slab_w = max(slab_w, 128 // num_heads)    # vreg-friendly offsets when possible
    hdw = num_heads * slab_w
    hdp = -(-hdw // 128) * 128                    # lane-dense (128-padded) slab width

    step = math.lcm(dst_tile, src_tile)
    n_pad = -(-n // step) * step

    f32 = jnp.float32
    x_p = jnp.pad(x.astype(f32), ((0, n_pad - n), (0, 0)))
    x_aug = jnp.concatenate([x_p, jnp.ones((n_pad, 1), f32)], axis=1)   # [n_pad, Din+1]
    # adj as int8: 0/1 exact; quarters the dominant O(N^2) HBM stream vs f32.
    adj_p = jnp.pad(adj.astype(jnp.int8), ((0, n_pad - n), (0, n_pad - n)))

    # W laid out into the per-head slab, plus a bias row that generates the
    # per-head ones (denominator) column via the same MXU pass.
    w_heads = w.astype(f32).reshape(d_in, num_heads, out_feats)
    w_slab = jnp.pad(w_heads, ((0, 0), (0, 0), (0, slab_w - out_feats)))
    w_slab = w_slab.reshape(d_in, hdw)
    ones_row = jnp.zeros((1, num_heads, slab_w), f32).at[0, :, out_feats].set(1.0)
    ones_row = ones_row.reshape(1, hdw)
    w_aug = jnp.concatenate([w_slab, ones_row], axis=0)                 # [Din+1, H*slab_w]
    w_aug = jnp.pad(w_aug, ((0, 0), (0, hdp - hdw)))                    # [Din+1, hdp]

    # Block-diagonal [attn_l | attn_r] in slab-row layout -> fused [el | er].
    al = jnp.pad(attn_l.astype(f32), ((0, 0), (0, slab_w - out_feats)))  # [H, slab_w]
    ar = jnp.pad(attn_r.astype(f32), ((0, 0), (0, slab_w - out_feats)))
    eye = jnp.eye(num_heads, dtype=f32)
    alm = (eye[:, None, :] * al[:, :, None]).reshape(hdw, num_heads)
    arm = (eye[:, None, :] * ar[:, :, None]).reshape(hdw, num_heads)
    aw = jnp.concatenate([alm, arm], axis=1)                             # [H*slab_w, 2H]
    aw = jnp.pad(aw, ((0, hdp - hdw), (0, 0)))                           # [hdp, 2H]

    # ---- 1) projection: feat slab / [el|er], computed once per node
    tp = 128
    feat, lr = pl.pallas_call(
        _gat_proj_kernel,
        grid=(n_pad // tp,),
        in_specs=[pl.BlockSpec((tp, d_in + 1), lambda i: (i, 0)),
                  pl.BlockSpec((d_in + 1, hdp), lambda i: (0, 0)),
                  pl.BlockSpec((hdp, 2 * num_heads), lambda i: (0, 0))],
        out_specs=(pl.BlockSpec((tp, hdp), lambda i: (i, 0)),
                   pl.BlockSpec((tp, 2 * num_heads), lambda i: (i, 0))),
        out_shape=(jax.ShapeDtypeStruct((n_pad, hdp), jnp.bfloat16),
                   jax.ShapeDtypeStruct((n_pad, 2 * num_heads), jnp.float32)),
        compiler_params=pltpu.CompilerParams(dimension_semantics=("parallel",)),
    )(x_aug, w_aug, aw)

    er = lr[:, num_heads:]                       # [n_pad, H]
    elt = lr[:, :num_heads].T                    # [H, n_pad]  tiny one-off XLA transpose

    # ---- 2) tiled online-softmax attention + aggregation
    out_p = pl.pallas_call(
        functools.partial(_gat_attn_kernel, num_heads=num_heads,
                          out_feats=out_feats, slab_w=slab_w,
                          negative_slope=negative_slope),
        grid=(n_pad // dst_tile, n_pad // src_tile),
        in_specs=[pl.BlockSpec((dst_tile, src_tile), lambda i, k: (i, k)),
                  pl.BlockSpec((dst_tile, num_heads), lambda i, k: (i, 0)),
                  pl.BlockSpec((num_heads, src_tile), lambda i, k: (0, k)),
                  pl.BlockSpec((src_tile, hdp), lambda i, k: (k, 0))],
        out_specs=pl.BlockSpec((dst_tile, hdp), lambda i, k: (i, 0)),
        out_shape=jax.ShapeDtypeStruct((n_pad, hdp), jnp.float32),
        scratch_shapes=[pltpu.VMEM((dst_tile, num_heads), jnp.float32),  # running max
                        pltpu.VMEM((dst_tile, hdp), jnp.float32)],       # acc (+denominator)
        compiler_params=pltpu.CompilerParams(
            dimension_semantics=("parallel", "arbitrary"),
            # Safe on v5e/v6e (128 MiB) and v7x (64 MiB physical); working set
            # at the default tiles is only a few MiB.
            vmem_limit_bytes=32 * 1024 * 1024),
    )(adj_p, er, elt, feat)

    out = out_p[:n, :hdw].reshape(n, num_heads, slab_w)
    return out[:, :, :out_feats]


def gat_conv_ref(x, adj, w, attn_l, attn_r, *, negative_slope=0.2):
    """Pure-JAX reference of the same semantics."""
    n = x.shape[0]
    num_heads, out_feats = attn_l.shape
    feat = (x @ w).reshape(n, num_heads, out_feats)                 # [N, H, D]
    el = jnp.sum(feat * attn_l[None], axis=-1)                      # [N, H]
    er = jnp.sum(feat * attn_r[None], axis=-1)                      # [N, H]
    e = el[None, :, :] + er[:, None, :]                             # [Ndst, Nsrc, H]
    e = jnp.where(e >= 0, e, negative_slope * e)
    mask = (adj > 0)[:, :, None]
    e = jnp.where(mask, e, -jnp.inf)
    alpha = jax.nn.softmax(e, axis=1)
    alpha = jnp.where(mask, alpha, 0.0)
    return jnp.einsum('ijh,jhd->ihd', alpha, feat)


if __name__ == "__main__":
    # Small synthetic problem consistent with the module's shapes.
    N, D_IN, NUM_HEADS, D_OUT = 200, 32, 4, 16
    NEG_SLOPE = 0.2

    key = jax.random.PRNGKey(0)
    k_x, k_adj, k_w, k_al, k_ar = jax.random.split(key, 5)

    x = jax.random.normal(k_x, (N, D_IN), dtype=jnp.float32)

    # Random graph + self-loops (adj[dst, src] = 1 if edge src -> dst).
    adj = (jax.random.uniform(k_adj, (N, N)) < 0.05).astype(jnp.float32)
    adj = jnp.maximum(adj, jnp.eye(N, dtype=jnp.float32))

    # Deterministic "xavier_normal_(gain=sqrt(2))"-style init.
    gain = jnp.sqrt(2.0)
    std_w = gain * jnp.sqrt(2.0 / (D_IN + NUM_HEADS * D_OUT))
    # torch fc.weight is [H*D, Din]; fc(x) = x @ weight.T, so pass w = weight.T.
    w = std_w * jax.random.normal(k_w, (D_IN, NUM_HEADS * D_OUT), dtype=jnp.float32)
    std_a = gain * jnp.sqrt(2.0 / (NUM_HEADS + D_OUT))
    attn_l = std_a * jax.random.normal(k_al, (NUM_HEADS, D_OUT), dtype=jnp.float32)
    attn_r = std_a * jax.random.normal(k_ar, (NUM_HEADS, D_OUT), dtype=jnp.float32)

    ref = gat_conv_ref(x, adj, w, attn_l, attn_r, negative_slope=NEG_SLOPE)

    # Tolerance reflects the bf16 feat / bf16 p PV-matmul path (f32 accumulate):
    # ~2^-9 relative per element, well inside 2e-2.
    ATOL = RTOL = 2e-2

    # Small tiles: exercises node padding and the multi-src-tile online softmax.
    out = jax.block_until_ready(
        gat_conv(x, adj, w, attn_l, attn_r, negative_slope=NEG_SLOPE,
                 dst_tile=128, src_tile=128))
    assert out.shape == (N, NUM_HEADS, D_OUT)
    err = jnp.max(jnp.abs(out - ref))
    assert jnp.allclose(out, ref, atol=ATOL, rtol=RTOL), f"max abs err = {err}"

    # Default (production-sized) tiles.
    out2 = jax.block_until_ready(
        gat_conv(x, adj, w, attn_l, attn_r, negative_slope=NEG_SLOPE))
    err2 = jnp.max(jnp.abs(out2 - ref))
    assert jnp.allclose(out2, ref, atol=ATOL, rtol=RTOL), f"max abs err = {err2}"

    print("KERNEL_OK")
</pallas_src>

<mosaic_0001>
module attributes {stable_mosaic.version = 11 : i64} {
  func.func @_gat_proj_kernel(%arg0: i32, %arg1: memref<128x33xf32, #tpu.memory_space<vmem>>, %arg2: memref<33x128xf32, #tpu.memory_space<vmem>>, %arg3: memref<128x8xf32, #tpu.memory_space<vmem>>, %arg4: memref<128x128xbf16, #tpu.memory_space<vmem>>, %arg5: memref<128x8xf32, #tpu.memory_space<vmem>>) attributes {dimension_semantics = [#tpu.dimension_semantics<parallel>], iteration_bounds = array<i64: 2>, scalar_prefetch = 0 : i64, scratch_operands = 0 : i64, tpu.core_type = #tpu.core_type<tc>, window_params = [{transform_indices = @transform_0, window_bounds = array<i64: 128, 33>}, {pipeline_mode = #tpu.pipeline_mode<synchronous>, transform_indices = @transform_1, window_bounds = array<i64: 33, 128>}, {pipeline_mode = #tpu.pipeline_mode<synchronous>, transform_indices = @transform_2, window_bounds = array<i64: 128, 8>}, {transform_indices = @transform_3, window_bounds = array<i64: 128, 128>}, {transform_indices = @transform_4, window_bounds = array<i64: 128, 8>}]} {
    %c0 = arith.constant 0 : index
    %c0_0 = arith.constant 0 : index
    %0 = vector.load %arg1[%c0, %c0_0] : memref<128x33xf32, #tpu.memory_space<vmem>>, vector<128x33xf32>
    %c0_1 = arith.constant 0 : index
    %c0_2 = arith.constant 0 : index
    %1 = vector.load %arg2[%c0_1, %c0_2] : memref<33x128xf32, #tpu.memory_space<vmem>>, vector<33x128xf32>
    %cst = arith.constant dense<0.000000e+00> : vector<128x128xf32>
    %2 = tpu.matmul %0, %1, %cst {dimension_numbers = #tpu.dot_dimension_numbers<[1], [0], [0], [1], [0, 0, 1, 1], [], []>} : vector<128x33xf32>, vector<33x128xf32>, vector<128x128xf32> -> vector<128x128xf32>
    %3 = arith.truncf %2 : vector<128x128xf32> to vector<128x128xbf16>
    %c0_3 = arith.constant 0 : index
    %c0_4 = arith.constant 0 : index
    %4 = vector.load %arg4[%c0_3, %c0_4] : memref<128x128xbf16, #tpu.memory_space<vmem>>, vector<128x128xbf16>
    tpu.vector_store %arg4[%c0_3, %c0_4], %3 {strides = array<i32>} : memref<128x128xbf16, #tpu.memory_space<vmem>>, vector<128x128xbf16>,
    %c0_5 = arith.constant 0 : index
    %c0_6 = arith.constant 0 : index
    %5 = vector.load %arg3[%c0_5, %c0_6] : memref<128x8xf32, #tpu.memory_space<vmem>>, vector<128x8xf32>
    %cst_7 = arith.constant dense<0.000000e+00> : vector<128x8xf32>
    %6 = tpu.matmul %2, %5, %cst_7 {dimension_numbers = #tpu.dot_dimension_numbers<[1], [0], [0], [1], [0, 0, 1, 1], [], []>} : vector<128x128xf32>, vector<128x8xf32>, vector<128x8xf32> -> vector<128x8xf32>
    %c0_8 = arith.constant 0 : index
    %c0_9 = arith.constant 0 : index
    %7 = vector.load %arg5[%c0_8, %c0_9] : memref<128x8xf32, #tpu.memory_space<vmem>>, vector<128x8xf32>
    tpu.vector_store %arg5[%c0_8, %c0_9], %6 {strides = array<i32>} : memref<128x8xf32, #tpu.memory_space<vmem>>, vector<128x8xf32>,
    return
  }
  func.func @transform_0(%arg0: i32) -> (i32, i32) {
    %c0_i32 = arith.constant 0 : i32
    %c0_i32_0 = arith.constant 0 : i32
    return %arg0, %c0_i32 : i32, i32
  }
  func.func @transform_1(%arg0: i32) -> (i32, i32) {
    %c0_i32 = arith.constant 0 : i32
    %c0_i32_0 = arith.constant 0 : i32
    %c0_i32_1 = arith.constant 0 : i32
    return %c0_i32, %c0_i32_0 : i32, i32
  }
  func.func @transform_2(%arg0: i32) -> (i32, i32) {
    %c0_i32 = arith.constant 0 : i32
    %c0_i32_0 = arith.constant 0 : i32
    %c0_i32_1 = arith.constant 0 : i32
    return %c0_i32, %c0_i32_0 : i32, i32
  }
  func.func @transform_3(%arg0: i32) -> (i32, i32) {
    %c0_i32 = arith.constant 0 : i32
    %c0_i32_0 = arith.constant 0 : i32
    return %arg0, %c0_i32 : i32, i32
  }
  func.func @transform_4(%arg0: i32) -> (i32, i32) {
    %c0_i32 = arith.constant 0 : i32
    %c0_i32_0 = arith.constant 0 : i32
    return %arg0, %c0_i32 : i32, i32
  }
}

</mosaic_0001>

<bundles_post_ra>
// kernel: tpu_custom_call.1
= control target key start
LH: loop header
LB: loop body
LE: loop exit
PB: predicated region body
PF: predicated region fallthrough
CT: control target
= control target key end

     0   :  { %10 = vsyncpa [#allocation3], 0  ;;  %s1503_s0 = inlined_call_operand.vmem [shape: f32[256,33], index: 0, kind: input, shape index: {}]   ;;  %s1504_s1 = inlined_call_operand.vmem [shape: f32[33,128], index: 1, kind: input, shape index: {}]   ;;  %s1505_s2 = inlined_call_operand.vmem [shape: f32[128,8], index: 2, kind: input, shape index: {}]   ;;  %s1506_s3 = inlined_call_operand.hbm [shape: bf16[256,128], index: 3, kind: output, shape index: {0}]   ;;  %s1507_s4 = inlined_call_operand.vmem [shape: f32[256,8], index: 4, kind: output, shape index: {1}]  }
   0x1   :  { %12 = vsyncpa [#allocation3 + $0x1], 0  ;;  %s1243_s15 = smov 0   ;;  %s1245_s16 = smov 0  }
   0x2   :  { %s1247_s17 = smov 0   ;;  %s1249_s18 = smov 0  }
   0x3 LB: > { %s1264_s19 = sadd.s32 4294967295, %s1213_s18   ;;  %s800_s20 = sadd.s32 4294967294, %s1213_s18   ;;  %s1213_s18 = sphi %s1249_s18, %s1513_s18   ;;  %s1209_s17 = sphi %s1247_s17, %s1512_s17   ;;  %s1205_s16 = sphi %s1245_s16, %s1511_s16   ;;  %s1201_s15 = sphi %s1243_s15, %s1510_s15  }
   0x4   : > { %s1268_s21 = sadd.s32 1, %s1213_s18   ;;  %s93_s22 = sadd.s32 1, %s1209_s17 }
   0x5   : > { %s90_s23 = ssub.s32 %s1213_s18, %s1268_s21  ;;  %p103_p0 = scmp.ne.s32.totalorder %s1209_s17, %s1205_s16 }
   0x6   : > { %p91_p1 = scmp.eq.s32.totalorder %s90_s23, 0  ;;  %p104_p2 = scmp.eq.s32.totalorder %s1264_s19, 1 }
   0x7   : > { %p109_p3 = scmp.ne.s32.totalorder %s1205_s16, %s1201_s15  ;;  %p110_p4 = scmp.eq.s32.totalorder %s800_s20, 1 }
   0x8   : > { %s1279_s24 = scalar_select %p91_p1, %s1209_s17, %s93_s22  }
   0x9   : > { %p1281_p5 = por %p104_p2, %p103_p0  ;;  %p1285_p6 = por %p110_p4, %p109_p3 }
   0xa   : > { %p803_p7 = scmp.ge.s32.totalorder %s1213_s18, 1  ;;  %p169_p8 = scmp.lt.s32.totalorder %s1213_s18, 3 }
   0xc   : > { %p170_p9 = pnand %p803_p7, %p169_p8 }
   0xd   : > { %v229_v0 = vld [vmem:[%s1504_s1] sm:$0xff] (!%p170_p9)  ;;  %v230_v1 = vld [vmem:[%s1504_s1 + $0x8] sm:$0xff] (!%p170_p9)  ;;  %v231_v2 = vld [vmem:[%s1504_s1 + $0x10] sm:$0xff] (!%p170_p9)  ;;  %s805_s7 = sshll.u32 (!%p170_p9), %s1264_s19, 4  ;;  %vm234_vm0 = vcmask (!%p170_p9), 269312   ;;  %vm283_vm1 = vcmask (!%p170_p9), 1040384  }
   0xe   : > { %173 = sbr.rel (%p170_p9) target bundleno = 482 (0x1e2), region = 32  ;;  %v1054_v3 = vpack.c.bf16 (!%p170_p9), %v230_v1, %v229_v0  ;;  %v232_v4 = vld [vmem:[%s1504_s1 + $0x18] sm:$0xff] (!%p170_p9)  ;;  %p201_p10 = scmp.lt.s32.totalorder (!%p170_p9), %s805_s7, 31  ;;  %v512_v5 = vld [vmem:[%s1505_s2] sm:$0xff] (!%p170_p9)  ;;  %v513_v7 = vld [vmem:[%s1505_s2 + $0x8] sm:$0xff] (!%p170_p9) }
   0xf   : > { %v1058_v6 = vpack.c.bf16 (!%p170_p9), %v232_v4, %v231_v2  ;;  %v514_v8 = vld [vmem:[%s1505_s2 + $0x10] sm:$0xff] (!%p170_p9)  ;;  %v515_v9 = vld [vmem:[%s1505_s2 + $0x18] sm:$0xff] (!%p170_p9)  ;;  %v1062_v10 = vpack.c.bf16 (!%p170_p9), %v513_v7, %v512_v5  ;;  %v233_v12 = vld [vmem:[%s1504_s1 + $0x20] sm:$0x1] (!%p170_p9)  ;;  %s190_s28 = sand.u32 (!%p170_p9), 1, %s1205_s16  }
  0x10   : > { %1055 = vmatprep.subr.bf16.mxu0 (!%p170_p9), %v1054_v3  ;;  %v1066_v11 = vpack.c.bf16 (!%p170_p9), %v515_v9, %v514_v8  ;;  %v516_v13 = vld [vmem:[%s1505_s2 + $0x20] sm:$0xff] (!%p170_p9)  ;;  %v517_v14 = vld [vmem:[%s1505_s2 + $0x28] sm:$0xff] (!%p170_p9)  ;;  %v518_v19 = vld [vmem:[%s1505_s2 + $0x30] sm:$0xff] (!%p170_p9)  ;;  %s804_s29 = sshll.u32 (!%p170_p9), %s190_s28, 6  ;;  %s1423_s11 = scalar_lea.sflag (!%p170_p9), [#allocation3], %s190_s28 }
  0x11   : > { %1057 = vmatpush3.bf16.msra.mxu0 (!%p170_p9), %v1054_v3  ;;  %1094 = vmatprep.subr.bf16.mxu1 (!%p170_p9), %v1062_v10  ;;  %v1070_v16 = vpack.c.bf16 (!%p170_p9), %v517_v14, %v516_v13  ;;  %v519_v20 = vld [vmem:[%s1505_s2 + $0x38] sm:$0xff] (!%p170_p9)  ;;  %v520_v24 = vld [vmem:[%s1505_s2 + $0x40] sm:$0xff] (!%p170_p9)  ;;  %v521_v25 = vld [vmem:[%s1505_s2 + $0x48] sm:$0xff] (!%p170_p9)  ;;  %s1402_s30 = scalar_lea.vmem (!%p170_p9), [#allocation2], %s804_s29 }
  0x12   : > { %1059 = vmatprep.subr.bf16.mxu0 (!%p170_p9), %v1058_v6  ;;  %1102 = vmatpush3.bf16.msra.mxu1 (!%p170_p9), %v1062_v10  ;;  %v1074_v22 = vpack.c.bf16 (!%p170_p9), %v519_v20, %v518_v19  ;;  %v1078_v27 = vpack.c.bf16 (!%p170_p9), %v521_v25, %v520_v24  ;;  %v522_v29 = vld [vmem:[%s1505_s2 + $0x50] sm:$0xff] (!%p170_p9)  ;;  %v523_v30 = vld [vmem:[%s1505_s2 + $0x58] sm:$0xff] (!%p170_p9)  ;;  %v524_v34 = vld [vmem:[%s1505_s2 + $0x60] sm:$0xff] (!%p170_p9)  ;;  %s709_s5 = sshll.u32 (!%p170_p9), %s1402_s30, 4  ;;  %s1419_s5 = int_to_ptr.vmem [resolvable:$true] %s709_s5 }
  0x13   : > { %1095 = vmatprep.subr.bf16.mxu1 (!%p170_p9), %v1066_v11  ;;  %v1082_v32 = vpack.c.bf16 (!%p170_p9), %v523_v30, %v522_v29  ;;  %v525_v35 = vld [vmem:[%s1505_s2 + $0x68] sm:$0xff] (!%p170_p9)  ;;  %v526_v39 = vld [vmem:[%s1505_s2 + $0x70] sm:$0xff] (!%p170_p9)  ;;  %v527_v40 = vld [vmem:[%s1505_s2 + $0x78] sm:$0xff] (!%p170_p9)  ;;  %s1151_s12 = scalar_lea.vmem (!%p170_p9), %s1419_s5, 1024 }
  0x14   : > { %v1086_v37 = vpack.c.bf16 (!%p170_p9), %v525_v35, %v524_v34  ;;  %v1090_v42 = vpack.c.bf16 (!%p170_p9), %v527_v40, %v526_v39  ;;  %p1152_p11 = scmp.ne.s32.totalorder (!%p170_p9), %s1419_s5, %s1151_s12 }
  0x15   : > { %s1515_s7 = smov (!%p201_p10, %s805_s7), 31  ;;  %1061 = vmatpush3.bf16.msra.mxu0 %v1058_v6 }
  0x16   : > { %s806_s27 = sshll.u32 %s1515_s7, 3  ;;  %972 = vmatprep.subr.msk.mxu0 %vm283_vm1, %v233_v12  ;;  %1103 = vmatpush3.bf16.msra.mxu1 %v1066_v11  ;;  %p1153_p12 = pnand %p1152_p11, %p1281_p5 }
  0x17   : > { %s1327_s6 = scalar_lea.vmem %s1503_s0, %s806_s27  ;;  %1096 = vmatprep.subr.bf16.mxu1 %v1070_v16 }
  0x18   : > { %v213_v15 = vld [vmem:[%s1327_s6] sm:$0xff]  ;;  %v214_v17 = vld [vmem:[%s1327_s6 + $0x8] sm:$0xff]  ;;  %v215_v18 = vld [vmem:[%s1327_s6 + $0x10] sm:$0xff]  ;;  %p1154_p13 = pneg %p1153_p12 }
  0x19   : > { %974 = vmatprep.mubr.msk.f32.mxu0 %vm234_vm0, %v213_v15  ;;  %973 = vmatpush3.msk.msra.mxu0 %vm283_vm1, %v233_v12  ;;  %v216_v21 = vld [vmem:[%s1327_s6 + $0x18] sm:$0xff]  ;;  %v217_v23 = vld [vmem:[%s1327_s6 + $0x20] sm:$0xff]  ;;  %v218_v26 = vld [vmem:[%s1327_s6 + $0x28] sm:$0xff] }
  0x1a   : > { %975 = vmatmul.mubr.msk.f32.vlgmr.msra.gmra.mrb[0].mxu0 %vm234_vm0, %v214_v17  ;;  %1063 = vmatprep.subr.bf16.mxu0 %v1062_v10  ;;  %v219_v28 = vld [vmem:[%s1327_s6 + $0x30] sm:$0xff]  ;;  %v220_v31 = vld [vmem:[%s1327_s6 + $0x38] sm:$0xff]  ;;  %v221_v33 = vld [vmem:[%s1327_s6 + $0x40] sm:$0xff] }
  0x1b   : > { %977 = vmatprep.mubr.msk.f32.mxu0 %vm234_vm0, %v215_v18  ;;  %1065 = vmatpush3.bf16.msra.mxu0 %v1062_v10  ;;  %v222_v36 = vld [vmem:[%s1327_s6 + $0x48] sm:$0xff]  ;;  %v223_v38 = vld [vmem:[%s1327_s6 + $0x50] sm:$0xff]  ;;  %v224_v41 = vld [vmem:[%s1327_s6 + $0x58] sm:$0xff] }
  0x1c   : > { %1067 = vmatprep.subr.bf16.mxu0 %v1066_v11  ;;  %1104 = vmatpush3.bf16.msra.mxu1 %v1070_v16  ;;  %v225_v43 = vld [vmem:[%s1327_s6 + $0x60] sm:$0xff]  ;;  %v226_v44 = vld [vmem:[%s1327_s6 + $0x68] sm:$0xff]  ;;  %v227_v45 = vld [vmem:[%s1327_s6 + $0x70] sm:$0xff] }
  0x1d   : > { %1097 = vmatprep.subr.bf16.mxu1 %v1074_v22  ;;  %v228_v46 = vld [vmem:[%s1327_s6 + $0x78] sm:$0xff]  ;;  %s863_s6 = sshll.u32 %s1264_s19, 10  ;;  %s1215_s19 = smov [#allocation2]  }
  0x1e   : > { %978 = vmatmul.mubr.msk.f32.gmra.mrb[2].mxu0 %vm234_vm0, %v216_v21  ;;  %s1417_s10 = scalar_lea.hbm %s1506_s3, %s863_s6  ;;  %s1155_s13 = sshll.u32 %s1215_s19, 4  ;;  %s1156_s13 = int_to_ptr.vmem [resolvable:$false] %s1155_s13 }
  0x1f   : > { %980 = vmatprep.mubr.msk.f32.mxu0 %vm234_vm0, %v217_v23  ;;  %1069 = vmatpush3.bf16.msra.mxu0 %v1066_v11  ;;  %s1157_s14 = scalar_lea.vmem %s1156_s13, 2048  ;;  %p1158_p0 = scmp.lt.s32.totalorder %s1419_s5, %s1156_s13 }
  0x20   : > { %1071 = vmatprep.subr.bf16.mxu0 %v1070_v16  ;;  %1105 = vmatpush3.bf16.msra.mxu1 %v1074_v22  ;;  %p1159_p1 = scmp.lt.s32.totalorder %s1157_s14, %s1151_s12 }
  0x21   : > { %1098 = vmatprep.subr.bf16.mxu1 %v1078_v27 }
  0x22   : > { %981 = vmatmul.mubr.msk.f32.gmra.mrb[4].mxu0 %vm234_vm0, %v218_v26  ;;  %p1160_p2 = por %p1159_p1, %p1158_p0 }
  0x23   : > { %983 = vmatprep.mubr.msk.f32.mxu0 %vm234_vm0, %v219_v28  ;;  %1073 = vmatpush3.bf16.msra.mxu0 %v1070_v16 }
  0x24   : > { %1075 = vmatprep.subr.bf16.mxu0 %v1074_v22  ;;  %1106 = vmatpush3.bf16.msra.mxu1 %v1078_v27  ;;  %p1161_p3 = pnand %p1160_p2, %p1154_p13 }
  0x25   : > { %1099 = vmatprep.subr.bf16.mxu1 %v1082_v32 }
  0x26   : > { %984 = vmatmul.mubr.msk.f32.gmra.mrb[6].mxu0 %vm234_vm0, %v220_v31 }
  0x27   : > { %986 = vmatprep.mubr.msk.f32.mxu0 %vm234_vm0, %v221_v33  ;;  %1077 = vmatpush3.bf16.msra.mxu0 %v1074_v22 }
  0x28   : > { %1079 = vmatprep.subr.bf16.mxu0 %v1078_v27  ;;  %1107 = vmatpush3.bf16.msra.mxu1 %v1082_v32 }
  0x29   : > { %1100 = vmatprep.subr.bf16.mxu1 %v1086_v37 }
  0x2a   : > { %987 = vmatmul.mubr.msk.f32.gmra.mrb[8].mxu0 %vm234_vm0, %v222_v36 }
  0x2b   : > { %989 = vmatprep.mubr.msk.f32.mxu0 %vm234_vm0, %v223_v38  ;;  %1081 = vmatpush3.bf16.msra.mxu0 %v1078_v27 }
  0x2c   : > { %1083 = vmatprep.subr.bf16.mxu0 %v1082_v32  ;;  %1108 = vmatpush3.bf16.msra.mxu1 %v1086_v37 }
  0x2d   : > { %1101 = vmatprep.subr.bf16.mxu1 %v1090_v42 }
  0x2e   : > { %990 = vmatmul.mubr.msk.f32.gmra.mrb[10].mxu0 %vm234_vm0, %v224_v41 }
  0x2f   : > { %992 = vmatprep.mubr.msk.f32.mxu0 %vm234_vm0, %v225_v43  ;;  %1085 = vmatpush3.bf16.msra.mxu0 %v1082_v32 }
  0x30   : > { %1087 = vmatprep.subr.bf16.mxu0 %v1086_v37  ;;  %1109 = vmatpush3.bf16.msra.mxu1 %v1090_v42 }
  0x32   : > { %993 = vmatmul.mubr.msk.f32.gmra.mrb[12].mxu0 %vm234_vm0, %v226_v44 }
  0x33   : > { %995 = vmatprep.mubr.msk.f32.mxu0 %vm234_vm0, %v227_v45  ;;  %1089 = vmatpush3.bf16.msra.mxu0 %v1086_v37 }
  0x34   : > { %1091 = vmatprep.subr.bf16.mxu0 %v1090_v42 }
  0x36   : > { %996 = vmatmul.mubr.msk.f32.gmra.mrb[14].mxu0 %vm234_vm0, %v228_v46 }
  0x37   : > { %1093 = vmatpush3.bf16.msra.mxu0 %v1090_v42 }
  0xed   : > { %v976_v47 = vpop.f32.mrb[0].mxu0 }
  0xee   : > { %v353_v48 = vpop.f32.mrb[1].mxu0 }
  0xef   : > { %v867_v49 = vpack.c.bf16 %v976_v47, %v353_v48  ;;  %1030 = vmatprep.mubr.f32.mxu0 %v353_v48 }
  0xf0   : > { %1031 = vmatmul.mubr.f32.vlgmr.msra.gmra.mrb[16].mxu0 %v976_v47 }
  0xf1   : > { %868 = vst [vmem:[%s1402_s30] sm:$0xff] %v867_v49   ;;  %v979_v50 = vpop.f32.mrb[2].mxu0 }
  0xf2   : > { %v363_v51 = vpop.f32.mrb[3].mxu0 }
  0xf3   : > { %v872_v52 = vpack.c.bf16 %v979_v50, %v363_v51  ;;  %1033 = vmatprep.mubr.f32.mxu0 %v363_v51 }
  0xf4   : > { %1034 = vmatmul.mubr.f32.gmra.mrb[18].mxu0 %v979_v50 }
  0xf5   : > { %904 = vst [vmem:[%s1402_s30 + $0x8] sm:$0xff] %v872_v52   ;;  %v982_v53 = vpop.f32.mrb[4].mxu0 }
  0xf6   : > { %v373_v54 = vpop.f32.mrb[5].mxu0 }
  0xf7   : > { %v877_v55 = vpack.c.bf16 %v982_v53, %v373_v54  ;;  %1036 = vmatprep.mubr.f32.mxu1 %v373_v54 }
  0xf8   : > { %1037 = vmatmul.mubr.f32.vlgmr.msra.gmra.mrb[0].mxu1 %v982_v53 }
  0xf9   : > { %905 = vst [vmem:[%s1402_s30 + $0x10] sm:$0xff] %v877_v55   ;;  %v985_v56 = vpop.f32.mrb[6].mxu0 }
  0xfa   : > { %v383_v57 = vpop.f32.mrb[7].mxu0 }
  0xfb   : > { %v882_v58 = vpack.c.bf16 %v985_v56, %v383_v57  ;;  %1039 = vmatprep.mubr.f32.mxu1 %v383_v57 }
  0xfc   : > { %1040 = vmatmul.mubr.f32.gmra.mrb[2].mxu1 %v985_v56 }
  0xfd   : > { %906 = vst [vmem:[%s1402_s30 + $0x18] sm:$0xff] %v882_v58   ;;  %v988_v59 = vpop.f32.mrb[8].mxu0 }
  0xfe   : > { %v393_v60 = vpop.f32.mrb[9].mxu0 }
  0xff   : > { %v887_v61 = vpack.c.bf16 %v988_v59, %v393_v60  ;;  %1042 = vmatprep.mubr.f32.mxu1 %v393_v60 }
 0x100   : > { %1043 = vmatmul.mubr.f32.gmra.mrb[4].mxu1 %v988_v59 }
 0x101   : > { %907 = vst [vmem:[%s1402_s30 + $0x20] sm:$0xff] %v887_v61   ;;  %v991_v62 = vpop.f32.mrb[10].mxu0 }
 0x102   : > { %v403_v63 = vpop.f32.mrb[11].mxu0 }
 0x103   : > { %v892_v0 = vpack.c.bf16 %v991_v62, %v403_v63  ;;  %1045 = vmatprep.mubr.f32.mxu1 %v403_v63 }
 0x104   : > { %1046 = vmatmul.mubr.f32.gmra.mrb[6].mxu1 %v991_v62 }
 0x105   : > { %908 = vst [vmem:[%s1402_s30 + $0x28] sm:$0xff] %v892_v0   ;;  %v994_v1 = vpop.f32.mrb[12].mxu0 }
 0x106   : > { %v413_v2 = vpop.f32.mrb[13].mxu0 }
 0x107   : > { %v897_v3 = vpack.c.bf16 %v994_v1, %v413_v2  ;;  %1048 = vmatprep.mubr.f32.mxu1 %v413_v2 }
 0x108   : > { %1049 = vmatmul.mubr.f32.gmra.mrb[8].mxu1 %v994_v1 }
 0x109   : > { %909 = vst [vmem:[%s1402_s30 + $0x30] sm:$0xff] %v897_v3   ;;  %v997_v4 = vpop.f32.mrb[14].mxu0 }
 0x10a   : > { %v423_v5 = vpop.f32.mrb[15].mxu0 }
 0x10b   : > { %v902_v6 = vpack.c.bf16 %v997_v4, %v423_v5  ;;  %1051 = vmatprep.mubr.f32.mxu1 %v423_v5 }
 0x10c   : > { %1052 = vmatmul.mubr.f32.gmra.mrb[10].mxu1 %v997_v4 }
 0x10d   : > { %910 = vst [vmem:[%s1402_s30 + $0x38] sm:$0xff] %v902_v6  }
 0x10e   : > { %1164 = shalt.err (!%p1161_p3)
}
 0x10f   : > { %s1165_s20 = scalar_lea.hbm %s1417_s10, 1024  ;;  %s1169_s28 = scalar_lea.hbm %s1506_s3, 2048 }
 0x110   : > { %p1166_p4 = scmp.ne.s32.totalorder %s1417_s10, %s1165_s20  ;;  %p1170_p9 = scmp.lt.u32.totalorder %s1417_s10, %s1506_s3 }
 0x111   : > { %p1171_p10 = scmp.lt.u32.totalorder %s1169_s28, %s1165_s20  ;;  %p1173_p12 = scmp.lt.u32.totalorder %s1165_s20, %s1417_s10 }
 0x112   : > { %p1167_p7 = pnand %p1166_p4, %p1281_p5 }
 0x113   : > { %p1172_p11 = por %p1171_p10, %p1170_p9 }
 0x114   : > { %p1168_p8 = pneg %p1167_p7 }
 0x115   : > { %p1174_p13 = por %p1173_p12, %p1172_p11 }
 0x117   : > { %p1175_p0 = pnand %p1174_p13, %p1168_p8 }
 0x119   : > { %1178 = shalt.err (!%p1175_p0)
}
 0x11a   : > { %s1216_s6 = smov 64   ;;  %s1217_s8 = smov 4   ;;  %vm673_vm2 = vcmask 64512  }
 0x11b   : > { %1110 = dma.vmem_to_hbm [thread:$0]  (%p1281_p5), %s1419_s5, 1024, %s1417_s10, %s1423_s11, %s1216_s6, %s1216_s6, %s1217_s8  }
 0x11c   : > { %s1452_s19 = scalar_lea.vmem %s1507_s4, %s806_s27 }
 0x1c3   : > { %v1032_v7 = vpop.f32.mrb[16].mxu0 }
 0x1c4   : > { %675 = vst.msk [vmem:[%s1452_s19 + $0x8] sm:$0xff] %vm673_vm2, %v1032_v7  ;;  %v594_v8 = vpop.f32.mrb[17].mxu0 }
 0x1c5   : > { %674 = vst.msk [vmem:[%s1452_s19] sm:$0xff] %vm673_vm2, %v594_v8 }
 0x1c7   : > { %v1035_v9 = vpop.f32.mrb[18].mxu0 }
 0x1c8   : > { %677 = vst.msk [vmem:[%s1452_s19 + $0x18] sm:$0xff] %vm673_vm2, %v1035_v9  ;;  %v604_v10 = vpop.f32.mrb[19].mxu0 }
 0x1c9   : > { %676 = vst.msk [vmem:[%s1452_s19 + $0x10] sm:$0xff] %vm673_vm2, %v604_v10 }
 0x1cb   : > { %v1038_v11 = vpop.f32.mrb[0].mxu1 }
 0x1cc   : > { %679 = vst.msk [vmem:[%s1452_s19 + $0x28] sm:$0xff] %vm673_vm2, %v1038_v11  ;;  %v614_v12 = vpop.f32.mrb[1].mxu1 }
 0x1cd   : > { %678 = vst.msk [vmem:[%s1452_s19 + $0x20] sm:$0xff] %vm673_vm2, %v614_v12 }
 0x1cf   : > { %v1041_v13 = vpop.f32.mrb[2].mxu1 }
 0x1d0   : > { %681 = vst.msk [vmem:[%s1452_s19 + $0x38] sm:$0xff] %vm673_vm2, %v1041_v13  ;;  %v624_v14 = vpop.f32.mrb[3].mxu1 }
 0x1d1   : > { %680 = vst.msk [vmem:[%s1452_s19 + $0x30] sm:$0xff] %vm673_vm2, %v624_v14 }
 0x1d3   : > { %v1044_v15 = vpop.f32.mrb[4].mxu1 }
 0x1d4   : > { %683 = vst.msk [vmem:[%s1452_s19 + $0x48] sm:$0xff] %vm673_vm2, %v1044_v15  ;;  %v634_v16 = vpop.f32.mrb[5].mxu1 }
 0x1d5   : > { %682 = vst.msk [vmem:[%s1452_s19 + $0x40] sm:$0xff] %vm673_vm2, %v634_v16 }
 0x1d7   : > { %v1047_v17 = vpop.f32.mrb[6].mxu1 }
 0x1d8   : > { %685 = vst.msk [vmem:[%s1452_s19 + $0x58] sm:$0xff] %vm673_vm2, %v1047_v17  ;;  %v644_v18 = vpop.f32.mrb[7].mxu1 }
 0x1d9   : > { %684 = vst.msk [vmem:[%s1452_s19 + $0x50] sm:$0xff] %vm673_vm2, %v644_v18 }
 0x1db   : > { %v1050_v19 = vpop.f32.mrb[8].mxu1 }
 0x1dc   : > { %687 = vst.msk [vmem:[%s1452_s19 + $0x68] sm:$0xff] %vm673_vm2, %v1050_v19  ;;  %v654_v20 = vpop.f32.mrb[9].mxu1 }
 0x1dd   : > { %686 = vst.msk [vmem:[%s1452_s19 + $0x60] sm:$0xff] %vm673_vm2, %v654_v20 }
 0x1df   : > { %v1053_v21 = vpop.f32.mrb[10].mxu1 }
 0x1e0   : > { %689 = vst.msk [vmem:[%s1452_s19 + $0x78] sm:$0xff] %vm673_vm2, %v1053_v21  ;;  %v664_v22 = vpop.f32.mrb[11].mxu1 }
 0x1e1   : > { %688 = vst.msk [vmem:[%s1452_s19 + $0x70] sm:$0xff] %vm673_vm2, %v664_v22 }
 0x1e2 PF: > { %p1116_p5 = scmp.ge.s32.totalorder %s1213_s18, 2  ;;  %s728_s25 = sand.u32 1, %s1201_s15  }
 0x1e3   : > { %s729_s7 = scalar_lea.sflag [#allocation3], %s728_s25 }
 0x1e4   : > { %p1113_p1 = pnand %p1116_p5, %p1285_p6 }
 0x1e6   : > { %1196 = dma.done.wait (!%p1113_p1), %s729_s7, 1024  }
 0x1e7   : > { %1198 = vsyncadd (!%p1113_p1), %s729_s7, 4294966272  ;;  %p15_p2 = scmp.ge.s32.totalorder %s1268_s21, 4   ;;  %s1510_s15 = smov %s1205_s16 }
 0x1e8   : > { %s1511_s16 = smov %s1209_s17  ;;  %s1512_s17 = smov %s1279_s24 }
 0x1e9   : > { %s1513_s18 = smov %s1268_s21  ;;  %17 = sbr.rel (!%p15_p2) target bundleno = 3 (0x3), region = 79 }
 0x1f0   :  { %742 = vsyncpa [#allocation3], 1 }
 0x1f1   :  { %744 = vsyncpa [#allocation3 + $0x1], 1 }

</bundles_post_ra>
